<compile_context>
chip_gen: v7x
topology: tpu7x:2x2x1
jax: 0.10.0
libtpu: 0.0.40
codegen_flags: <defaults>
</compile_context>

<pallas_src>
import functools
import math

import jax
import jax.numpy as jnp
from jax.experimental import pallas as pl
from jax.experimental.pallas import tpu as pltpu


def _align8(v):
    return -(-v // 8) * 8


def _batch_block_size(batch):
    """Grid policy: v7x has two TensorCores per chip -> keep one batch element
    per grid step and let the 'parallel' axis spread across cores.  v5e/v6e
    are single-TC -> collapse the batch into one grid step (per-step pipeline
    overhead is ~0.35us, a real fraction of this overhead-bound kernel)."""
    try:
        kind = jax.devices()[0].device_kind.lower()
    except Exception:
        return 1
    if "v7" in kind or "7x" in kind:
        return 1
    return batch


# ------------------------------ fused kernel -------------------------------- #

def _tgcn_cell_kernel(cat_ref, catp_ref, adj_ref, adjb_ref, w_ref, out_ref,
                      *, N, H, nw, r_b1, r_wh2, r_wx2, r_b2):
    """conv1 -> sigmoid -> chunk -> conv2 -> tanh -> GRU blend, fully in VMEM."""
    f32 = jnp.float32
    half = N // 2
    bb = cat_ref.shape[0]                      # batch elements in this block

    # Resident weight slab -> static slices (single DMA window for all weights).
    w1r = w_ref[0:nw, :]                       # (nw, 2H): [wh1 ; wx1 ; 0-pad]
    b1 = w_ref[r_b1:r_b1 + 1, :]               # (1, 2H)
    wh2 = w_ref[r_wh2:r_wh2 + H, 0:H]          # (H, H)
    wx2 = w_ref[r_wx2:r_wx2 + 1, 0:H]          # (1, H)
    b2 = w_ref[r_b2:r_b2 + 1, 0:H]             # (1, H)

    for b in range(bb):                        # static unroll over batch block
        adj = adj_ref[b]                       # (N, N)
        adjb = adjb_ref[b]                     # (N, N), even-then-odd row/col order
        cat = cat_ref[b]                       # (N, nw)  = [h | x | 0-pad]
        catp = catp_ref[b]                     # (N/2, 2*nw): node pair (2p, 2p+1)

        # ---- graph_conv1: sigmoid(A @ [x|h] @ W1 + b1); x folded as a column.
        axh = jnp.dot(adj, cat, preferred_element_type=f32)            # (N, nw)
        g1 = jax.nn.sigmoid(
            jnp.dot(axh, w1r, preferred_element_type=f32) + b1)        # (N, 2H)

        # ---- torch.chunk on the flattened (N*2H,) vector == sublane halves of
        # g1 when r/u are viewed in the paired (N/2, 2H) layout (no relayout).
        r_p = g1[:half, :]                     # r: pairs (r[2p], r[2p+1])
        u_p = g1[half:, :]                     # u: pairs (u[2p], u[2p+1])

        h_lo = catp[:, 0:H]                    # h[2p]
        x_e = catp[:, H:H + 1]                 # x[2p]
        h_hi = catp[:, nw:nw + H]              # h[2p+1]
        x_o = catp[:, nw + H:nw + H + 1]       # x[2p+1]

        rh_lo = r_p[:, 0:H] * h_lo             # (r*h)[2p]
        rh_hi = r_p[:, H:] * h_hi              # (r*h)[2p+1]

        # ---- graph_conv2 in packed layout:
        #   c = tanh(A @ ([x | r*h] @ W2) + b2)
        # Z = [x|r*h] @ W2 evaluated per pair column-half (even/odd node rows),
        # then A @ Z via the four blocks of the even/odd-permuted adjacency.
        z_lo = x_e * wx2 + jnp.dot(rh_lo, wh2, preferred_element_type=f32)
        z_hi = x_o * wx2 + jnp.dot(rh_hi, wh2, preferred_element_type=f32)

        a_ee = adjb[:half, :half]
        a_eo = adjb[:half, half:]
        a_oe = adjb[half:, :half]
        a_oo = adjb[half:, half:]

        c_lo = jnp.tanh(jnp.dot(a_ee, z_lo, preferred_element_type=f32)
                        + jnp.dot(a_eo, z_hi, preferred_element_type=f32) + b2)
        c_hi = jnp.tanh(jnp.dot(a_oe, z_lo, preferred_element_type=f32)
                        + jnp.dot(a_oo, z_hi, preferred_element_type=f32) + b2)

        # ---- GRU blend, written directly in the packed output layout
        # (same HBM bytes as the (N, H) layout).
        u_lo = u_p[:, 0:H]
        u_hi = u_p[:, H:]
        out_ref[b, :, 0:H] = u_lo * h_lo + (1.0 - u_lo) * c_lo
        out_ref[b, :, H:] = u_hi * h_hi + (1.0 - u_hi) * c_hi


# ------------------------------ pallas_call glue ---------------------------- #

def tgcn_cell_forward(params, inputs, input_adj, hidden_state):
    """Matches TGCNCell.forward(inputs, input_adj, hidden_state)."""
    f32 = jnp.float32
    B, N = inputs.shape
    H = params["w2"].shape[1]                  # hidden_dim (static)
    assert N % 2 == 0, "torch.chunk pairing requires an even number of nodes"
    assert hidden_state.shape == (B, N * H)
    half = N // 2

    # Per-node feature row [h(0..H-1) | x | 0-pad], padded to 8-lane multiples
    # so that all static in-kernel slices sit on aligned offsets.
    nw = _align8(H + 1)
    r_b1 = nw
    r_wh2 = _align8(r_b1 + 1)
    r_wx2 = _align8(r_wh2 + H)
    r_b2 = _align8(r_wx2 + 1)
    w_rows = _align8(r_b2 + 1)

    h3 = hidden_state.reshape(B, N, H)
    parts = [h3, inputs[:, :, None].astype(f32)]
    pad = nw - (H + 1)
    if pad:
        parts.append(jnp.zeros((B, N, pad), f32))
    catw = jnp.concatenate(parts, axis=-1)                 # (B, N, nw)
    catw_p = catw.reshape(B, half, 2 * nw)                 # free metadata reshape

    # Even/odd-permuted adjacency: blocks [[A_ee, A_eo], [A_oe, A_oo]].
    eo = jnp.concatenate([jnp.arange(0, N, 2), jnp.arange(1, N, 2)])
    adj_blk = input_adj[:, eo][:, :, eo]                   # (B, N, N)

    # Single resident weight slab (sections 8-sublane aligned).
    w1, b1 = params["w1"], params["b1"]                    # (H+1, 2H), (2H,)
    w2, b2 = params["w2"], params["b2"]                    # (H+1, H),  (H,)
    wslab = jnp.zeros((w_rows, 2 * H), f32)
    wslab = wslab.at[0:H, :].set(w1[1:, :])                # wh1
    wslab = wslab.at[H, :].set(w1[0, :])                   # wx1 (x col of catw)
    wslab = wslab.at[r_b1, :].set(b1)
    wslab = wslab.at[r_wh2:r_wh2 + H, 0:H].set(w2[1:, :])  # wh2
    wslab = wslab.at[r_wx2, 0:H].set(w2[0, :])             # wx2
    wslab = wslab.at[r_b2, 0:H].set(b2)

    bb = _batch_block_size(B)                  # 1 on v7x, B on v5e/v6e
    assert B % bb == 0
    nb = B // bb

    kernel = functools.partial(
        _tgcn_cell_kernel, N=N, H=H, nw=nw,
        r_b1=r_b1, r_wh2=r_wh2, r_wx2=r_wx2, r_b2=r_b2)

    out_p = pl.pallas_call(
        kernel,
        out_shape=jax.ShapeDtypeStruct((B, half, 2 * H), f32),
        grid=(nb,),
        in_specs=[
            pl.BlockSpec((bb, N, nw), lambda i: (i, 0, 0)),        # [h|x] std
            pl.BlockSpec((bb, half, 2 * nw), lambda i: (i, 0, 0)),  # [h|x] paired
            pl.BlockSpec((bb, N, N), lambda i: (i, 0, 0)),          # adjacency
            pl.BlockSpec((bb, N, N), lambda i: (i, 0, 0)),          # eo-permuted adj
            pl.BlockSpec((w_rows, 2 * H), lambda i: (0, 0)),        # weight slab
        ],
        out_specs=pl.BlockSpec((bb, half, 2 * H), lambda i: (i, 0, 0)),
        compiler_params=pltpu.CompilerParams(
            dimension_semantics=("parallel",),
            vmem_limit_bytes=32 * 1024 * 1024,   # footprint is a few KB on all gens
        ),
    )(catw, catw_p, input_adj, adj_blk, wslab)

    new_h = out_p.reshape(B, N * H)             # same bytes as the (N, H) layout
    return new_h, new_h


# ------------------------------- parameters -------------------------------- #

def init_params(key, hidden_dim):
    H = hidden_dim

    def xavier(k, shape):
        fan_in, fan_out = shape
        bound = math.sqrt(6.0 / (fan_in + fan_out))
        return jax.random.uniform(k, shape, jnp.float32, -bound, bound)

    k1, k2 = jax.random.split(key)
    return {
        "w1": xavier(k1, (H + 1, 2 * H)),
        "b1": jnp.full((2 * H,), 1.0, dtype=jnp.float32),   # bias = 1.0
        "w2": xavier(k2, (H + 1, H)),
        "b2": jnp.zeros((H,), dtype=jnp.float32),           # bias = 0.0
    }


# ------------------------------ plain-JAX reference ------------------------- #

def tgcn_cell_reference(params, inputs, input_adj, hidden_state):
    B, N = inputs.shape
    H = params["w2"].shape[1]

    def gc(w, b, hid):
        x = inputs.reshape(B, N, 1)
        h = hid.reshape(B, N, H)
        cat = jnp.concatenate([x, h], axis=2)
        axc = jnp.einsum("bij,bjk->bik", input_adj, cat)
        out = axc.reshape(B * N, H + 1) @ w + b
        return out.reshape(B, N * w.shape[1])

    conc = jax.nn.sigmoid(gc(params["w1"], params["b1"], hidden_state))
    r, u = jnp.split(conc, 2, axis=1)
    c = jnp.tanh(gc(params["w2"], params["b2"], r * hidden_state))
    return u * hidden_state + (1.0 - u) * c


# ----------------------------------- main ----------------------------------- #

if __name__ == "__main__":
    B, N, H = 2, 16, 32   # batch, num_nodes, hidden_dim (1 scalar feature/node)

    key = jax.random.PRNGKey(0)
    kp, kx, ka, kh = jax.random.split(key, 4)

    params = init_params(kp, H)
    inputs = jax.random.normal(kx, (B, N), dtype=jnp.float32)
    adj_raw = jax.random.uniform(ka, (B, N, N), dtype=jnp.float32)
    input_adj = adj_raw / jnp.sum(adj_raw, axis=-1, keepdims=True)  # row-normalized
    hidden_state = jax.random.normal(kh, (B, N * H), dtype=jnp.float32)

    new_h, _ = jax.jit(tgcn_cell_forward)(params, inputs, input_adj, hidden_state)
    new_h = jax.block_until_ready(new_h)

    ref = tgcn_cell_reference(params, inputs, input_adj, hidden_state)
    assert new_h.shape == (B, N * H)
    max_err = float(jnp.max(jnp.abs(new_h - ref)))
    assert jnp.allclose(new_h, ref, atol=1e-4, rtol=1e-4), max_err

    print("KERNEL_OK")
</pallas_src>

<mosaic_0001>
module attributes {stable_mosaic.version = 11 : i64} {
  func.func @_tgcn_cell_kernel(%arg0: i32, %arg1: memref<2x16x40xf32, #tpu.memory_space<vmem>>, %arg2: memref<2x8x80xf32, #tpu.memory_space<vmem>>, %arg3: memref<2x16x16xf32, #tpu.memory_space<vmem>>, %arg4: memref<2x16x16xf32, #tpu.memory_space<vmem>>, %arg5: memref<96x64xf32, #tpu.memory_space<vmem>>, %arg6: memref<2x8x64xf32, #tpu.memory_space<vmem>>) attributes {dimension_semantics = [#tpu.dimension_semantics<parallel>], iteration_bounds = array<i64: 1>, scalar_prefetch = 0 : i64, scratch_operands = 0 : i64, tpu.core_type = #tpu.core_type<tc>, window_params = [{transform_indices = @transform_0, window_bounds = array<i64: 2, 16, 40>}, {transform_indices = @transform_1, window_bounds = array<i64: 2, 8, 80>}, {transform_indices = @transform_2, window_bounds = array<i64: 2, 16, 16>}, {transform_indices = @transform_3, window_bounds = array<i64: 2, 16, 16>}, {pipeline_mode = #tpu.pipeline_mode<synchronous>, transform_indices = @transform_4, window_bounds = array<i64: 96, 64>}, {transform_indices = @transform_5, window_bounds = array<i64: 2, 8, 64>}]} {
    %c0 = arith.constant 0 : index
    %c0_0 = arith.constant 0 : index
    %0 = vector.load %arg5[%c0, %c0_0] : memref<96x64xf32, #tpu.memory_space<vmem>>, vector<40x64xf32>
    %c40 = arith.constant 40 : index
    %c0_1 = arith.constant 0 : index
    %1 = vector.load %arg5[%c40, %c0_1] : memref<96x64xf32, #tpu.memory_space<vmem>>, vector<1x64xf32>
    %c48 = arith.constant 48 : index
    %c0_2 = arith.constant 0 : index
    %2 = vector.load %arg5[%c48, %c0_2] : memref<96x64xf32, #tpu.memory_space<vmem>>, vector<32x32xf32>
    %c80 = arith.constant 80 : index
    %c0_3 = arith.constant 0 : index
    %3 = vector.load %arg5[%c80, %c0_3] : memref<96x64xf32, #tpu.memory_space<vmem>>, vector<1x32xf32>
    %c88 = arith.constant 88 : index
    %c0_4 = arith.constant 0 : index
    %4 = vector.load %arg5[%c88, %c0_4] : memref<96x64xf32, #tpu.memory_space<vmem>>, vector<1x32xf32>
    %c0_5 = arith.constant 0 : index
    %c0_6 = arith.constant 0 : index
    %c0_7 = arith.constant 0 : index
    %5 = vector.load %arg3[%c0_5, %c0_6, %c0_7] : memref<2x16x16xf32, #tpu.memory_space<vmem>>, vector<1x16x16xf32>
    %6 = vector.shape_cast %5 : vector<1x16x16xf32> to vector<16x16xf32>
    %c0_8 = arith.constant 0 : index
    %c0_9 = arith.constant 0 : index
    %c0_10 = arith.constant 0 : index
    %7 = vector.load %arg4[%c0_8, %c0_9, %c0_10] : memref<2x16x16xf32, #tpu.memory_space<vmem>>, vector<1x16x16xf32>
    %8 = vector.shape_cast %7 : vector<1x16x16xf32> to vector<16x16xf32>
    %c0_11 = arith.constant 0 : index
    %c0_12 = arith.constant 0 : index
    %c0_13 = arith.constant 0 : index
    %9 = vector.load %arg1[%c0_11, %c0_12, %c0_13] : memref<2x16x40xf32, #tpu.memory_space<vmem>>, vector<1x16x40xf32>
    %10 = vector.shape_cast %9 : vector<1x16x40xf32> to vector<16x40xf32>
    %c0_14 = arith.constant 0 : index
    %c0_15 = arith.constant 0 : index
    %c0_16 = arith.constant 0 : index
    %11 = vector.load %arg2[%c0_14, %c0_15, %c0_16] : memref<2x8x80xf32, #tpu.memory_space<vmem>>, vector<1x8x80xf32>
    %12 = vector.shape_cast %11 : vector<1x8x80xf32> to vector<8x80xf32>
    %cst = arith.constant dense<0.000000e+00> : vector<16x40xf32>
    %13 = tpu.matmul %6, %10, %cst {dimension_numbers = #tpu.dot_dimension_numbers<[1], [0], [0], [1], [0, 0, 1, 1], [], []>} : vector<16x16xf32>, vector<16x40xf32>, vector<16x40xf32> -> vector<16x40xf32>
    %cst_17 = arith.constant dense<0.000000e+00> : vector<16x64xf32>
    %14 = tpu.matmul %13, %0, %cst_17 {dimension_numbers = #tpu.dot_dimension_numbers<[1], [0], [0], [1], [0, 0, 1, 1], [], []>} : vector<16x40xf32>, vector<40x64xf32>, vector<16x64xf32> -> vector<16x64xf32>
    %15 = vector.broadcast %1 : vector<1x64xf32> to vector<16x64xf32>
    %16 = arith.addf %14, %15 : vector<16x64xf32>
    %17 = arith.negf %16 : vector<16x64xf32>
    %18 = math.exp %17 : vector<16x64xf32>
    %cst_18 = arith.constant 1.000000e+00 : f32
    %19 = vector.broadcast %cst_18 : f32 to vector<16x64xf32>
    %20 = arith.addf %19, %18 : vector<16x64xf32>
    %21 = arith.divf %19, %20 : vector<16x64xf32>
    %22 = vector.extract_strided_slice %21 {offsets = [0, 0], sizes = [8, 64], strides = [1, 1]} : vector<16x64xf32> to vector<8x64xf32>
    %23 = vector.extract_strided_slice %21 {offsets = [8, 0], sizes = [8, 64], strides = [1, 1]} : vector<16x64xf32> to vector<8x64xf32>
    %24 = vector.extract_strided_slice %12 {offsets = [0, 0], sizes = [8, 32], strides = [1, 1]} : vector<8x80xf32> to vector<8x32xf32>
    %25 = vector.extract_strided_slice %12 {offsets = [0, 32], sizes = [8, 1], strides = [1, 1]} : vector<8x80xf32> to vector<8x1xf32>
    %26 = vector.extract_strided_slice %12 {offsets = [0, 40], sizes = [8, 32], strides = [1, 1]} : vector<8x80xf32> to vector<8x32xf32>
    %27 = vector.extract_strided_slice %12 {offsets = [0, 72], sizes = [8, 1], strides = [1, 1]} : vector<8x80xf32> to vector<8x1xf32>
    %28 = vector.extract_strided_slice %22 {offsets = [0, 0], sizes = [8, 32], strides = [1, 1]} : vector<8x64xf32> to vector<8x32xf32>
    %29 = arith.mulf %28, %24 : vector<8x32xf32>
    %30 = vector.extract_strided_slice %22 {offsets = [0, 32], sizes = [8, 32], strides = [1, 1]} : vector<8x64xf32> to vector<8x32xf32>
    %31 = arith.mulf %30, %26 : vector<8x32xf32>
    %32 = vector.broadcast %25 : vector<8x1xf32> to vector<8x32xf32>
    %33 = vector.broadcast %3 : vector<1x32xf32> to vector<8x32xf32>
    %34 = arith.mulf %32, %33 : vector<8x32xf32>
    %cst_19 = arith.constant dense<0.000000e+00> : vector<8x32xf32>
    %35 = tpu.matmul %29, %2, %cst_19 {dimension_numbers = #tpu.dot_dimension_numbers<[1], [0], [0], [1], [0, 0, 1, 1], [], []>} : vector<8x32xf32>, vector<32x32xf32>, vector<8x32xf32> -> vector<8x32xf32>
    %36 = arith.addf %34, %35 : vector<8x32xf32>
    %37 = vector.broadcast %27 : vector<8x1xf32> to vector<8x32xf32>
    %38 = vector.broadcast %3 : vector<1x32xf32> to vector<8x32xf32>
    %39 = arith.mulf %37, %38 : vector<8x32xf32>
    %cst_20 = arith.constant dense<0.000000e+00> : vector<8x32xf32>
    %40 = tpu.matmul %31, %2, %cst_20 {dimension_numbers = #tpu.dot_dimension_numbers<[1], [0], [0], [1], [0, 0, 1, 1], [], []>} : vector<8x32xf32>, vector<32x32xf32>, vector<8x32xf32> -> vector<8x32xf32>
    %41 = arith.addf %39, %40 : vector<8x32xf32>
    %42 = vector.extract_strided_slice %8 {offsets = [0, 0], sizes = [8, 8], strides = [1, 1]} : vector<16x16xf32> to vector<8x8xf32>
    %43 = vector.extract_strided_slice %8 {offsets = [0, 8], sizes = [8, 8], strides = [1, 1]} : vector<16x16xf32> to vector<8x8xf32>
    %44 = vector.extract_strided_slice %8 {offsets = [8, 0], sizes = [8, 8], strides = [1, 1]} : vector<16x16xf32> to vector<8x8xf32>
    %45 = vector.extract_strided_slice %8 {offsets = [8, 8], sizes = [8, 8], strides = [1, 1]} : vector<16x16xf32> to vector<8x8xf32>
    %cst_21 = arith.constant dense<0.000000e+00> : vector<8x32xf32>
    %46 = tpu.matmul %42, %36, %cst_21 {dimension_numbers = #tpu.dot_dimension_numbers<[1], [0], [0], [1], [0, 0, 1, 1], [], []>} : vector<8x8xf32>, vector<8x32xf32>, vector<8x32xf32> -> vector<8x32xf32>
    %cst_22 = arith.constant dense<0.000000e+00> : vector<8x32xf32>
    %47 = tpu.matmul %43, %41, %cst_22 {dimension_numbers = #tpu.dot_dimension_numbers<[1], [0], [0], [1], [0, 0, 1, 1], [], []>} : vector<8x8xf32>, vector<8x32xf32>, vector<8x32xf32> -> vector<8x32xf32>
    %48 = arith.addf %46, %47 : vector<8x32xf32>
    %49 = vector.broadcast %4 : vector<1x32xf32> to vector<8x32xf32>
    %50 = arith.addf %48, %49 : vector<8x32xf32>
    %51 = math.tanh %50 : vector<8x32xf32>
    %cst_23 = arith.constant dense<0.000000e+00> : vector<8x32xf32>
    %52 = tpu.matmul %44, %36, %cst_23 {dimension_numbers = #tpu.dot_dimension_numbers<[1], [0], [0], [1], [0, 0, 1, 1], [], []>} : vector<8x8xf32>, vector<8x32xf32>, vector<8x32xf32> -> vector<8x32xf32>
    %cst_24 = arith.constant dense<0.000000e+00> : vector<8x32xf32>
    %53 = tpu.matmul %45, %41, %cst_24 {dimension_numbers = #tpu.dot_dimension_numbers<[1], [0], [0], [1], [0, 0, 1, 1], [], []>} : vector<8x8xf32>, vector<8x32xf32>, vector<8x32xf32> -> vector<8x32xf32>
    %54 = arith.addf %52, %53 : vector<8x32xf32>
    %55 = vector.broadcast %4 : vector<1x32xf32> to vector<8x32xf32>
    %56 = arith.addf %54, %55 : vector<8x32xf32>
    %57 = math.tanh %56 : vector<8x32xf32>
    %58 = vector.extract_strided_slice %23 {offsets = [0, 0], sizes = [8, 32], strides = [1, 1]} : vector<8x64xf32> to vector<8x32xf32>
    %59 = vector.extract_strided_slice %23 {offsets = [0, 32], sizes = [8, 32], strides = [1, 1]} : vector<8x64xf32> to vector<8x32xf32>
    %60 = arith.mulf %58, %24 : vector<8x32xf32>
    %cst_25 = arith.constant 1.000000e+00 : f32
    %61 = vector.broadcast %cst_25 : f32 to vector<8x32xf32>
    %62 = arith.subf %61, %58 : vector<8x32xf32>
    %63 = arith.mulf %62, %51 : vector<8x32xf32>
    %64 = arith.addf %60, %63 : vector<8x32xf32>
    %c0_26 = arith.constant 0 : index
    %c0_27 = arith.constant 0 : index
    %c0_28 = arith.constant 0 : index
    %65 = vector.load %arg6[%c0_26, %c0_27, %c0_28] : memref<2x8x64xf32, #tpu.memory_space<vmem>>, vector<1x8x32xf32>
    %66 = vector.shape_cast %65 : vector<1x8x32xf32> to vector<8x32xf32>
    %67 = vector.shape_cast %64 : vector<8x32xf32> to vector<1x8x32xf32>
    tpu.vector_store %arg6[%c0_26, %c0_27, %c0_28], %67 {strides = array<i32>} : memref<2x8x64xf32, #tpu.memory_space<vmem>>, vector<1x8x32xf32>,
    %68 = arith.mulf %59, %26 : vector<8x32xf32>
    %cst_29 = arith.constant 1.000000e+00 : f32
    %69 = vector.broadcast %cst_29 : f32 to vector<8x32xf32>
    %70 = arith.subf %69, %59 : vector<8x32xf32>
    %71 = arith.mulf %70, %57 : vector<8x32xf32>
    %72 = arith.addf %68, %71 : vector<8x32xf32>
    %c0_30 = arith.constant 0 : index
    %c0_31 = arith.constant 0 : index
    %c32 = arith.constant 32 : index
    %73 = vector.load %arg6[%c0_30, %c0_31, %c32] : memref<2x8x64xf32, #tpu.memory_space<vmem>>, vector<1x8x32xf32>
    %74 = vector.shape_cast %73 : vector<1x8x32xf32> to vector<8x32xf32>
    %75 = vector.shape_cast %72 : vector<8x32xf32> to vector<1x8x32xf32>
    tpu.vector_store %arg6[%c0_30, %c0_31, %c32], %75 {strides = array<i32>} : memref<2x8x64xf32, #tpu.memory_space<vmem>>, vector<1x8x32xf32>,
    %c1 = arith.constant 1 : index
    %c0_32 = arith.constant 0 : index
    %c0_33 = arith.constant 0 : index
    %76 = vector.load %arg3[%c1, %c0_32, %c0_33] : memref<2x16x16xf32, #tpu.memory_space<vmem>>, vector<1x16x16xf32>
    %77 = vector.shape_cast %76 : vector<1x16x16xf32> to vector<16x16xf32>
    %c1_34 = arith.constant 1 : index
    %c0_35 = arith.constant 0 : index
    %c0_36 = arith.constant 0 : index
    %78 = vector.load %arg4[%c1_34, %c0_35, %c0_36] : memref<2x16x16xf32, #tpu.memory_space<vmem>>, vector<1x16x16xf32>
    %79 = vector.shape_cast %78 : vector<1x16x16xf32> to vector<16x16xf32>
    %c1_37 = arith.constant 1 : index
    %c0_38 = arith.constant 0 : index
    %c0_39 = arith.constant 0 : index
    %80 = vector.load %arg1[%c1_37, %c0_38, %c0_39] : memref<2x16x40xf32, #tpu.memory_space<vmem>>, vector<1x16x40xf32>
    %81 = vector.shape_cast %80 : vector<1x16x40xf32> to vector<16x40xf32>
    %c1_40 = arith.constant 1 : index
    %c0_41 = arith.constant 0 : index
    %c0_42 = arith.constant 0 : index
    %82 = vector.load %arg2[%c1_40, %c0_41, %c0_42] : memref<2x8x80xf32, #tpu.memory_space<vmem>>, vector<1x8x80xf32>
    %83 = vector.shape_cast %82 : vector<1x8x80xf32> to vector<8x80xf32>
    %cst_43 = arith.constant dense<0.000000e+00> : vector<16x40xf32>
    %84 = tpu.matmul %77, %81, %cst_43 {dimension_numbers = #tpu.dot_dimension_numbers<[1], [0], [0], [1], [0, 0, 1, 1], [], []>} : vector<16x16xf32>, vector<16x40xf32>, vector<16x40xf32> -> vector<16x40xf32>
    %cst_44 = arith.constant dense<0.000000e+00> : vector<16x64xf32>
    %85 = tpu.matmul %84, %0, %cst_44 {dimension_numbers = #tpu.dot_dimension_numbers<[1], [0], [0], [1], [0, 0, 1, 1], [], []>} : vector<16x40xf32>, vector<40x64xf32>, vector<16x64xf32> -> vector<16x64xf32>
    %86 = vector.broadcast %1 : vector<1x64xf32> to vector<16x64xf32>
    %87 = arith.addf %85, %86 : vector<16x64xf32>
    %88 = arith.negf %87 : vector<16x64xf32>
    %89 = math.exp %88 : vector<16x64xf32>
    %cst_45 = arith.constant 1.000000e+00 : f32
    %90 = vector.broadcast %cst_45 : f32 to vector<16x64xf32>
    %91 = arith.addf %90, %89 : vector<16x64xf32>
    %92 = arith.divf %90, %91 : vector<16x64xf32>
    %93 = vector.extract_strided_slice %92 {offsets = [0, 0], sizes = [8, 64], strides = [1, 1]} : vector<16x64xf32> to vector<8x64xf32>
    %94 = vector.extract_strided_slice %92 {offsets = [8, 0], sizes = [8, 64], strides = [1, 1]} : vector<16x64xf32> to vector<8x64xf32>
    %95 = vector.extract_strided_slice %83 {offsets = [0, 0], sizes = [8, 32], strides = [1, 1]} : vector<8x80xf32> to vector<8x32xf32>
    %96 = vector.extract_strided_slice %83 {offsets = [0, 32], sizes = [8, 1], strides = [1, 1]} : vector<8x80xf32> to vector<8x1xf32>
    %97 = vector.extract_strided_slice %83 {offsets = [0, 40], sizes = [8, 32], strides = [1, 1]} : vector<8x80xf32> to vector<8x32xf32>
    %98 = vector.extract_strided_slice %83 {offsets = [0, 72], sizes = [8, 1], strides = [1, 1]} : vector<8x80xf32> to vector<8x1xf32>
    %99 = vector.extract_strided_slice %93 {offsets = [0, 0], sizes = [8, 32], strides = [1, 1]} : vector<8x64xf32> to vector<8x32xf32>
    %100 = arith.mulf %99, %95 : vector<8x32xf32>
    %101 = vector.extract_strided_slice %93 {offsets = [0, 32], sizes = [8, 32], strides = [1, 1]} : vector<8x64xf32> to vector<8x32xf32>
    %102 = arith.mulf %101, %97 : vector<8x32xf32>
    %103 = vector.broadcast %96 : vector<8x1xf32> to vector<8x32xf32>
    %104 = vector.broadcast %3 : vector<1x32xf32> to vector<8x32xf32>
    %105 = arith.mulf %103, %104 : vector<8x32xf32>
    %cst_46 = arith.constant dense<0.000000e+00> : vector<8x32xf32>
    %106 = tpu.matmul %100, %2, %cst_46 {dimension_numbers = #tpu.dot_dimension_numbers<[1], [0], [0], [1], [0, 0, 1, 1], [], []>} : vector<8x32xf32>, vector<32x32xf32>, vector<8x32xf32> -> vector<8x32xf32>
    %107 = arith.addf %105, %106 : vector<8x32xf32>
    %108 = vector.broadcast %98 : vector<8x1xf32> to vector<8x32xf32>
    %109 = vector.broadcast %3 : vector<1x32xf32> to vector<8x32xf32>
    %110 = arith.mulf %108, %109 : vector<8x32xf32>
    %cst_47 = arith.constant dense<0.000000e+00> : vector<8x32xf32>
    %111 = tpu.matmul %102, %2, %cst_47 {dimension_numbers = #tpu.dot_dimension_numbers<[1], [0], [0], [1], [0, 0, 1, 1], [], []>} : vector<8x32xf32>, vector<32x32xf32>, vector<8x32xf32> -> vector<8x32xf32>
    %112 = arith.addf %110, %111 : vector<8x32xf32>
    %113 = vector.extract_strided_slice %79 {offsets = [0, 0], sizes = [8, 8], strides = [1, 1]} : vector<16x16xf32> to vector<8x8xf32>
    %114 = vector.extract_strided_slice %79 {offsets = [0, 8], sizes = [8, 8], strides = [1, 1]} : vector<16x16xf32> to vector<8x8xf32>
    %115 = vector.extract_strided_slice %79 {offsets = [8, 0], sizes = [8, 8], strides = [1, 1]} : vector<16x16xf32> to vector<8x8xf32>
    %116 = vector.extract_strided_slice %79 {offsets = [8, 8], sizes = [8, 8], strides = [1, 1]} : vector<16x16xf32> to vector<8x8xf32>
    %cst_48 = arith.constant dense<0.000000e+00> : vector<8x32xf32>
    %117 = tpu.matmul %113, %107, %cst_48 {dimension_numbers = #tpu.dot_dimension_numbers<[1], [0], [0], [1], [0, 0, 1, 1], [], []>} : vector<8x8xf32>, vector<8x32xf32>, vector<8x32xf32> -> vector<8x32xf32>
    %cst_49 = arith.constant dense<0.000000e+00> : vector<8x32xf32>
    %118 = tpu.matmul %114, %112, %cst_49 {dimension_numbers = #tpu.dot_dimension_numbers<[1], [0], [0], [1], [0, 0, 1, 1], [], []>} : vector<8x8xf32>, vector<8x32xf32>, vector<8x32xf32> -> vector<8x32xf32>
    %119 = arith.addf %117, %118 : vector<8x32xf32>
    %120 = vector.broadcast %4 : vector<1x32xf32> to vector<8x32xf32>
    %121 = arith.addf %119, %120 : vector<8x32xf32>
    %122 = math.tanh %121 : vector<8x32xf32>
    %cst_50 = arith.constant dense<0.000000e+00> : vector<8x32xf32>
    %123 = tpu.matmul %115, %107, %cst_50 {dimension_numbers = #tpu.dot_dimension_numbers<[1], [0], [0], [1], [0, 0, 1, 1], [], []>} : vector<8x8xf32>, vector<8x32xf32>, vector<8x32xf32> -> vector<8x32xf32>
    %cst_51 = arith.constant dense<0.000000e+00> : vector<8x32xf32>
    %124 = tpu.matmul %116, %112, %cst_51 {dimension_numbers = #tpu.dot_dimension_numbers<[1], [0], [0], [1], [0, 0, 1, 1], [], []>} : vector<8x8xf32>, vector<8x32xf32>, vector<8x32xf32> -> vector<8x32xf32>
    %125 = arith.addf %123, %124 : vector<8x32xf32>
    %126 = vector.broadcast %4 : vector<1x32xf32> to vector<8x32xf32>
    %127 = arith.addf %125, %126 : vector<8x32xf32>
    %128 = math.tanh %127 : vector<8x32xf32>
    %129 = vector.extract_strided_slice %94 {offsets = [0, 0], sizes = [8, 32], strides = [1, 1]} : vector<8x64xf32> to vector<8x32xf32>
    %130 = vector.extract_strided_slice %94 {offsets = [0, 32], sizes = [8, 32], strides = [1, 1]} : vector<8x64xf32> to vector<8x32xf32>
    %131 = arith.mulf %129, %95 : vector<8x32xf32>
    %cst_52 = arith.constant 1.000000e+00 : f32
    %132 = vector.broadcast %cst_52 : f32 to vector<8x32xf32>
    %133 = arith.subf %132, %129 : vector<8x32xf32>
    %134 = arith.mulf %133, %122 : vector<8x32xf32>
    %135 = arith.addf %131, %134 : vector<8x32xf32>
    %c1_53 = arith.constant 1 : index
    %c0_54 = arith.constant 0 : index
    %c0_55 = arith.constant 0 : index
    %136 = vector.load %arg6[%c1_53, %c0_54, %c0_55] : memref<2x8x64xf32, #tpu.memory_space<vmem>>, vector<1x8x32xf32>
    %137 = vector.shape_cast %136 : vector<1x8x32xf32> to vector<8x32xf32>
    %138 = vector.shape_cast %135 : vector<8x32xf32> to vector<1x8x32xf32>
    tpu.vector_store %arg6[%c1_53, %c0_54, %c0_55], %138 {strides = array<i32>} : memref<2x8x64xf32, #tpu.memory_space<vmem>>, vector<1x8x32xf32>,
    %139 = arith.mulf %130, %97 : vector<8x32xf32>
    %cst_56 = arith.constant 1.000000e+00 : f32
    %140 = vector.broadcast %cst_56 : f32 to vector<8x32xf32>
    %141 = arith.subf %140, %130 : vector<8x32xf32>
    %142 = arith.mulf %141, %128 : vector<8x32xf32>
    %143 = arith.addf %139, %142 : vector<8x32xf32>
    %c1_57 = arith.constant 1 : index
    %c0_58 = arith.constant 0 : index
    %c32_59 = arith.constant 32 : index
    %144 = vector.load %arg6[%c1_57, %c0_58, %c32_59] : memref<2x8x64xf32, #tpu.memory_space<vmem>>, vector<1x8x32xf32>
    %145 = vector.shape_cast %144 : vector<1x8x32xf32> to vector<8x32xf32>
    %146 = vector.shape_cast %143 : vector<8x32xf32> to vector<1x8x32xf32>
    tpu.vector_store %arg6[%c1_57, %c0_58, %c32_59], %146 {strides = array<i32>} : memref<2x8x64xf32, #tpu.memory_space<vmem>>, vector<1x8x32xf32>,
    return
  }
  func.func @transform_0(%arg0: i32) -> (i32, i32, i32) {
    %c0_i32 = arith.constant 0 : i32
    %c0_i32_0 = arith.constant 0 : i32
    %c0_i32_1 = arith.constant 0 : i32
    return %arg0, %c0_i32, %c0_i32_0 : i32, i32, i32
  }
  func.func @transform_1(%arg0: i32) -> (i32, i32, i32) {
    %c0_i32 = arith.constant 0 : i32
    %c0_i32_0 = arith.constant 0 : i32
    %c0_i32_1 = arith.constant 0 : i32
    return %arg0, %c0_i32, %c0_i32_0 : i32, i32, i32
  }
  func.func @transform_2(%arg0: i32) -> (i32, i32, i32) {
    %c0_i32 = arith.constant 0 : i32
    %c0_i32_0 = arith.constant 0 : i32
    %c0_i32_1 = arith.constant 0 : i32
    return %arg0, %c0_i32, %c0_i32_0 : i32, i32, i32
  }
  func.func @transform_3(%arg0: i32) -> (i32, i32, i32) {
    %c0_i32 = arith.constant 0 : i32
    %c0_i32_0 = arith.constant 0 : i32
    %c0_i32_1 = arith.constant 0 : i32
    return %arg0, %c0_i32, %c0_i32_0 : i32, i32, i32
  }
  func.func @transform_4(%arg0: i32) -> (i32, i32) {
    %c0_i32 = arith.constant 0 : i32
    %c0_i32_0 = arith.constant 0 : i32
    %c0_i32_1 = arith.constant 0 : i32
    return %c0_i32, %c0_i32_0 : i32, i32
  }
  func.func @transform_5(%arg0: i32) -> (i32, i32, i32) {
    %c0_i32 = arith.constant 0 : i32
    %c0_i32_0 = arith.constant 0 : i32
    %c0_i32_1 = arith.constant 0 : i32
    return %arg0, %c0_i32, %c0_i32_0 : i32, i32, i32
  }
}

</mosaic_0001>

<bundles_post_ra>
// kernel: tgcn_cell_forward.1
= control target key start
LH: loop header
LB: loop body
LE: loop exit
PB: predicated region body
PF: predicated region fallthrough
CT: control target
= control target key end

     0   :  { %vm39_vm0 = vcmask 130048   ;;  %s1675_s13 = smov 120   ;;  %vm125_vm1 = vcmask 326656   ;;  %v1676_v17 = vmov 0.0|0.0   ;;  %vm1677_vm2 = vmmov 0   ;;  %s1681_s30 = smov 96   ;;  %s1956_s0 = inlined_call_operand.vmem [shape: f32[2,16,40], index: 0, kind: input, shape index: {}]   ;;  %s1957_s2 = inlined_call_operand.vmem [shape: f32[2,16,16], index: 2, kind: input, shape index: {}]   ;;  %s1958_s4 = inlined_call_operand.vmem [shape: f32[96,64], index: 4, kind: input, shape index: {}]   ;;  %s1959_s1 = inlined_call_operand.vmem [shape: f32[2,8,80], index: 1, kind: input, shape index: {}]   ;;  %s1960_s3 = inlined_call_operand.vmem [shape: f32[2,16,16], index: 3, kind: input, shape index: {}]   ;;  %s1961_s5 = inlined_call_operand.vmem [shape: f32[2,8,64], index: 5, kind: output, shape index: {}]  }
   0x1   :  { %v36_v0 = vld [vmem:[%s1956_s0] sm:$0xff]  ;;  %v37_v1 = vld [vmem:[%s1956_s0 + $0x8] sm:$0xff]  ;;  %v22_v7 = vld [vmem:[%s1958_s4 + $0x10] sm:$0xff]  ;;  %v1678_v22 = vmov 0.0   ;;  %v1679_v23 = vmov 32   ;;  %v1680_v31 = vmov 72  }
   0x2   :  { %v32_v2 = vld [vmem:[%s1957_s2] sm:$0xff]  ;;  %v1592_v3 = vpack.c.bf16 %v37_v1, %v36_v0  ;;  %v21_v5 = vld [vmem:[%s1958_s4 + $0x8] sm:$0xff]  ;;  %v23_v8 = vld [vmem:[%s1958_s4 + $0x18] sm:$0xff]  ;;  %1649 = vset.pattern.permute.xlu0 %v1679_v23  ;;  %1648 = vset.pattern.permute.xlu1 %v1680_v31  ;;  %vm234_vm3 = vcmask 261120   ;;  %vm393_vm4 = vcmask 64512   ;;  %vm705_vm5 = vcmask 523520  }
   0x3   :  { %1472 = vmatprep.mubr.msk.f32.mxu0 %vm39_vm0, %v32_v2  ;;  %v20_v4 = vld [vmem:[%s1958_s4] sm:$0xff]  ;;  %v1737_v9 = vpack.c.bf16 %v23_v8, %v22_v7  ;;  %v33_v10 = vld [vmem:[%s1957_s2 + $0x8] sm:$0xff]  ;;  %v26_v15 = vld [vmem:[%s1958_s4 + $0x30] sm:$0xff] }
   0x4   :  { %v1729_v6 = vpack.c.bf16 %v21_v5, %v20_v4  ;;  %1593 = vmatprep.subr.bf16.mxu0 %v1592_v3  ;;  %v1750_v11 = vld [vmem:[%s1958_s4 + $0x20] sm:$0xff]  ;;  %v27_v16 = vld [vmem:[%s1958_s4 + $0x38] sm:$0xff]  ;;  %v29_v20 = vld [vmem:[%s1958_s4 + $0x48] sm:$0xff] }
   0x5   :  { %1595 = vmatpush3.bf16.msra.mxu0 %v1592_v3  ;;  %v1757_v12 = vld [vmem:[%s1959_s1] sm:$0xff]  ;;  %v1770_v18 = vpack.c.bf16 %v27_v16, %v26_v15  ;;  %v1796_v24 = vld [vmem:[%s1958_s4 + $0x28] ss:$0 sm:$0xff]  ;;  %v1834_v43 = vld [vmem:[%s1958_s4 + $0x50] ss:$0 sm:$0xff] }
   0x6   :  { %1597 = vmatprep.subr.bf16.mxu1 %v1729_v6  ;;  %221 = vrot.lane.b32.xlu0 %v1757_v12, %s1675_s13  ;;  %v28_v19 = vld [vmem:[%s1958_s4 + $0x40] sm:$0xff]  ;;  %v35_v32 = vld [vmem:[%s1960_s3 + $0x8] sm:$0xff]  ;;  %v1393_v47 = vld [vmem:[%s1956_s0 + $0x10] sm:$0xff] }
   0x7   :  { %1599 = vmatpush3.bf16.msra.mxu1 %v1729_v6  ;;  %1604 = vmatprep.subr.bf16.mxu0 %v1676_v17  ;;  %v1783_v21 = vpack.c.bf16 %v29_v20, %v28_v19  ;;  %v34_v33 = vld [vmem:[%s1960_s3] sm:$0xff]  ;;  %v1818_v38 = vld [vmem:[%s1959_s1 + $0x8] sm:$0xff]  ;;  %v1394_v48 = vld [vmem:[%s1956_s0 + $0x18] sm:$0xff] }
   0x8   :  { %1601 = vmatprep.subr.bf16.mxu1 %v1737_v9  ;;  %1473 = vmatmul.mubr.msk.f32.vlgmr.msra.gmra.mrb[0].mxu0 %vm39_vm0, %v33_v10  ;;  %v1616_v53 = vpack.c.bf16 %v1394_v48, %v1393_v47  ;;  %v1389_v56 = vld [vmem:[%s1957_s2 + $0x10] sm:$0xff]  ;;  %v1390_v57 = vld [vmem:[%s1957_s2 + $0x18] sm:$0xff] }
   0x9   :  { %1606 = vmatpush3.bf16.msra.mxu0 %v1770_v18  ;;  %1496 = vmatprep.mubr.msk.f32.mxu0 %vm1677_vm2, %v1678_v22  ;;  %v1879_v58 = vld [vmem:[%s1960_s3 + $0x10] sm:$0xff]  ;;  %v1888_v3 = vld [vmem:[%s1958_s4 + $0x58] ss:$0 sm:$0xff]  ;;  %s1682_s4 = smov 32  }
   0xa   :  { %1607 = vmatprep.subr.bf16.mxu0 %v1676_v17  ;;  %310 = vperm.xlu1 %1648, %v1757_v12  }
   0xb   :  { %1603 = vmatpush3.bf16.msra.mxu1 %v1737_v9 }
   0xc   :  { %1483 = vmatprep.subr.mxu1 %v1750_v11 }
   0xd   :  { %1609 = vmatpush3.bf16.msra.mxu0 %v1783_v21 }
   0xe   :  { %1510 = vmatprep.subr.mxu0 %v1678_v22  ;;  %545 = vrot.lane.b32.xlu1 %v35_v32, %s1675_s13 }
   0xf   :  { %1484 = vmatpush3.msra.mxu1 %v1750_v11 }
  0x10   :  { %1610 = vmatprep.subr.bf16.mxu1 %v1676_v17 }
  0x12   :  { %391 = vrot.lane.b32.xlu1 %v34_v33, %s1675_s13 }
  0x16   :  { %894 = vrot.lane.b32.xlu1 %v1818_v38, %s1675_s13 }
  0x1a   :  { %978 = vperm.xlu1 %1648, %v1818_v38  }
  0x1e   :  { %1059 = vrot.lane.b32.xlu1 %v1879_v58, %s1675_s13 }
  0x78   :  { %v1810_v34 = vpop.permute.xlu0 %221 }
  0x89   :  { %v311_v42 = vpop.permute.xlu1 %310 }
  0x8a   :  { %v313_v45 = vmul.f32 %v1834_v43, %v311_v42 }
  0x8d   :  { %v546_v46 = vpop.permute.xlu1 %545 }
  0x91   :  { %v392_v54 = vpop.permute.xlu1 %391 }
  0xdb   :  { %v1474_v13 = vpop.f32.mrb[0].mxu0 }
  0xdc   :  { %v112_v14 = vpop.f32.mrb[1].mxu0 }
  0xdd   :  { %1485 = vmatprep.mubr.msk.f32.mxu1 %vm125_vm1, %v112_v14 }
  0xde   :  { %1486 = vmatmul.mubr.msk.f32.vlgmr.msra.gmra.mrb[0].mxu1 %vm125_vm1, %v1474_v13 }
  0xdf   :  { %1612 = vmatpush3.bf16.msra.mxu1 %v1770_v18  ;;  %1507 = vmatprep.mubr.msk.f32.mxu1 %vm1677_vm2, %v1678_v22 }
  0xe0   :  { %1613 = vmatprep.subr.bf16.mxu1 %v1676_v17 }
  0xe3   :  { %1615 = vmatpush3.bf16.msra.mxu1 %v1783_v21 }
  0xe4   :  { %1520 = vmatprep.subr.mxu1 %v1678_v22 }
 0x1b1   :  { %v1798_v25 = vpop.f32.mrb[0].mxu1 }
 0x1b2   :  { %v198_v26 = vpop.f32.mrb[1].mxu1  ;;  %v204_v59 = vadd.f32 %v1798_v25, %v1796_v24 }
 0x1b3   :  { %v199_v27 = vadd.f32 %v1796_v24, %v198_v26 }
 0x1b4   :  { %v1380_v60 = vmul.f32 -1.442695, %v204_v59 }
 0x1b5   :  { %v1379_v28 = vmul.f32 -1.442695, %v199_v27 }
 0x1b7   :  { %1651 = vpow2.f32 %v1379_v28 }
 0x1c1   :  { %v1652_v29 = vpop.eup %1651 }
 0x1c2   :  { %v213_v30 = vadd.f32 1.0, %v1652_v29 }
 0x1c4   :  { %1653 = vrcp.f32 %v213_v30 }
 0x1c5   :  { %1655 = vpow2.f32 %v1380_v60 }
 0x1ce   :  { %v1654_v35 = vpop.eup %1653 }
 0x1cf   :  { %v224_v36 = vmul.f32 %v1654_v35, %v1810_v34  ;;  %v219_v37 = vmul.f32 %v1654_v35, %v1757_v12  ;;  %v1656_v61 = vpop.eup %1655 }
 0x1d0   :  { %v214_v63 = vadd.f32 1.0, %v1656_v61 }
 0x1d1   :  { %315 = vrot.lane.b32.xlu0 %v224_v36, %s1681_s30  ;;  %1497 = vmatmul.mubr.msk.f32.vlgmr.msra.gmra.mrb[2].mxu0 %vm234_vm3, %v219_v37 }
 0x1d2   :  { %1512 = vmatprep.mubr.msk.f32.mxu0 %vm1677_vm2, %v1678_v22  ;;  %1657 = vrcp.f32 %v214_v63 }
 0x1d5   :  { %226 = vperm.xlu0 %1649, %v1757_v12  }
 0x1dc   :  { %v1658_v15 = vpop.eup %1657 }
 0x1dd   :  { %v694_v16 = vsub.f32 1.0, %v1658_v15  ;;  %v693_v20 = vmul.f32 %v1658_v15, %v1757_v12  ;;  %v698_v28 = vmul.f32 %v1658_v15, %v1810_v34 }
 0x243   :  { %v316_v39 = vpop.permute.xlu0 %315 }
 0x244   :  { %1508 = vmatmul.mubr.msk.f32.vlgmr.msra.gmra.mrb[2].mxu1 %vm234_vm3, %v316_v39 }
 0x245   :  { %1522 = vmatprep.mubr.msk.f32.mxu1 %vm1677_vm2, %v1678_v22 }
 0x254   :  { %v227_v44 = vpop.permute.xlu0 %226 }
 0x255   :  { %v233_v49 = vmul.f32 %v1834_v43, %v227_v44 }
 0x2a4   :  { %v304_v40 = vpop.f32.mrb[2].mxu0 }
 0x2a5   :  { %v1498_v41 = vpop.f32.mrb[3].mxu0  ;;  %v308_v55 = vadd.f32 %v304_v40, %v233_v49 }
 0x2a6   :  { %v1392_v41 = vld [vmem:[%s1960_s3 + $0x18] sm:$0xff] }
 0x317   :  { %v385_v50 = vpop.f32.mrb[2].mxu1 }
 0x318   :  { %v389_v51 = vadd.f32 %v385_v50, %v313_v45  ;;  %v1509_v52 = vpop.f32.mrb[3].mxu1 }
 0x31a   :  { %1511 = vmatpush3.msra.mxu0 %v389_v51  ;;  %1521 = vmatpush3.msra.mxu1 %v389_v51 }
 0x31b   :  { %1513 = vmatmul.mubr.msk.f32.vlgmr.msra.gmra.mrb[4].mxu0 %vm393_vm4, %v392_v54  ;;  %1515 = vmatprep.subr.mxu0 %v1678_v22 }
 0x31c   :  { %1523 = vmatmul.mubr.msk.f32.vlgmr.msra.gmra.mrb[4].mxu1 %vm393_vm4, %v546_v46  ;;  %1617 = vmatprep.subr.bf16.mxu1 %v1616_v53 }
 0x31d   :  { %1516 = vmatpush3.msra.mxu0 %v308_v55  ;;  %1619 = vmatpush3.bf16.msra.mxu1 %v1616_v53 }
 0x31e   :  { %1517 = vmatprep.mubr.msk.f32.mxu0 %vm1677_vm2, %v1678_v22  ;;  %1525 = vmatprep.subr.mxu0 %v1678_v22 }
 0x31f   :  { %1534 = vmatprep.mubr.msk.f32.mxu1 %vm39_vm0, %v1389_v56  ;;  %1518 = vmatmul.mubr.msk.f32.vlgmr.msra.gmra.mrb[6].mxu0 %vm393_vm4, %v34_v33 }
 0x320   :  { %1526 = vmatpush3.msra.mxu0 %v308_v55  ;;  %1535 = vmatmul.mubr.msk.f32.vlgmr.msra.gmra.mrb[6].mxu1 %vm39_vm0, %v1390_v57 }
 0x321   :  { %1527 = vmatprep.mubr.msk.f32.mxu0 %vm1677_vm2, %v1678_v22  ;;  %1621 = vmatprep.subr.bf16.mxu0 %v1729_v6 }
 0x322   :  { %1628 = vmatprep.subr.bf16.mxu1 %v1676_v17  ;;  %1558 = vmatprep.mubr.msk.f32.mxu1 %vm1677_vm2, %v1678_v22 }
 0x323   :  { %1528 = vmatmul.mubr.msk.f32.vlgmr.msra.gmra.mrb[8].mxu0 %vm393_vm4, %v35_v32  ;;  %1630 = vmatpush3.bf16.msra.mxu1 %v1770_v18 }
 0x324   :  { %1623 = vmatpush3.bf16.msra.mxu0 %v1729_v6  ;;  %1631 = vmatprep.subr.bf16.mxu1 %v1676_v17 }
 0x325   :  { %1625 = vmatprep.subr.bf16.mxu0 %v1737_v9 }
 0x327   :  { %1633 = vmatpush3.bf16.msra.mxu1 %v1783_v21 }
 0x328   :  { %1627 = vmatpush3.bf16.msra.mxu0 %v1737_v9  ;;  %1572 = vmatprep.subr.mxu1 %v1678_v22 }
 0x329   :  { %1545 = vmatprep.subr.mxu0 %v1750_v11 }
 0x32c   :  { %1546 = vmatpush3.msra.mxu0 %v1750_v11 }
 0x32d   :  { %1634 = vmatprep.subr.bf16.mxu0 %v1676_v17 }
 0x3ee   :  { %v462_v62 = vpop.f32.mrb[4].mxu0 }
 0x3ef   :  { %v615_v0 = vpop.f32.mrb[4].mxu1  ;;  %v1514_v1 = vpop.f32.mrb[5].mxu0 }
 0x3f0   :  { %v1524_v2 = vpop.f32.mrb[5].mxu1 }
 0x3f2   :  { %v534_v4 = vpop.f32.mrb[6].mxu0 }
 0x3f3   :  { %v535_v5 = vadd.f32 %v534_v4, %v462_v62  ;;  %v1536_v6 = vpop.f32.mrb[6].mxu1  ;;  %v1519_v7 = vpop.f32.mrb[7].mxu0 }
 0x3f4   :  { %v790_v8 = vpop.f32.mrb[7].mxu1 }
 0x3f5   :  { %v542_v9 = vadd.f32 %v1888_v3, %v535_v5  ;;  %1547 = vmatprep.mubr.msk.f32.mxu0 %vm125_vm1, %v790_v8 }
 0x3f6   :  { %1548 = vmatmul.mubr.msk.f32.vlgmr.msra.gmra.mrb[10].mxu0 %vm125_vm1, %v1536_v6  ;;  %v687_v10 = vpop.f32.mrb[8].mxu0 }
 0x3f7   :  { %1659 = vtanh.f32 %v542_v9  ;;  %v688_v11 = vadd.f32 %v687_v10, %v615_v0  ;;  %v1529_v13 = vpop.f32.mrb[9].mxu0  ;;  %1636 = vmatpush3.bf16.msra.mxu0 %v1770_v18  ;;  %1569 = vmatprep.mubr.msk.f32.mxu0 %vm1677_vm2, %v1678_v22 }
 0x3f8   :  { %1637 = vmatprep.subr.bf16.mxu0 %v1676_v17  ;;  %v1906_v17 = vpop.permute.xlu1 %894 }
 0x3f9   :  { %v691_v14 = vadd.f32 %v1888_v3, %v688_v11 }
 0x3fb   :  { %1661 = vtanh.f32 %v691_v14  ;;  %1639 = vmatpush3.bf16.msra.mxu0 %v1783_v21 }
 0x3fc   :  { %1582 = vmatprep.subr.mxu0 %v1678_v22  ;;  %v979_v21 = vpop.permute.xlu1 %978 }
 0x3fd   :  { %v981_v47 = vmul.f32 %v1834_v43, %v979_v21 }
 0x400   :  { %v1060_v26 = vpop.permute.xlu1 %1059 }
 0x401   :  { %v1660_v19 = vpop.eup %1659 }
 0x402   :  { %v695_v23 = vmul.f32 %v1660_v19, %v694_v16 }
 0x404   :  { %v696_v25 = vadd.f32 %v695_v23, %v693_v20 }
 0x405   :  { %v1662_v18 = vpop.eup %1661 }
 0x406   :  { %700 = vrot.lane.b32.xlu1 %v1662_v18, %s1682_s4  ;;  %697 = vst.msk [vmem:[%s1961_s5] sm:$0xff] %vm234_vm3, %v696_v25 }
 0x478   :  { %v701_v27 = vpop.permute.xlu1 %700 }
 0x479   :  { %v703_v29 = vmul.f32 %v701_v27, %v694_v16 }
 0x47b   :  { %v704_v12 = vadd.f32 %v703_v29, %v698_v28 }
 0x47d   :  { %706 = vst.msk [vmem:[%s1961_s5] sm:$0xff] %vm705_vm5, %v704_v12 }
 0x4c9   :  { %v1549_v30 = vpop.f32.mrb[10].mxu0 }
 0x4ca   :  { %v871_v32 = vpop.f32.mrb[11].mxu0 }
 0x4cb   :  { %v872_v33 = vadd.f32 %v1796_v24, %v871_v32 }
 0x4cd   :  { %v1400_v35 = vmul.f32 -1.442695, %v872_v33 }
 0x4cf   :  { %1663 = vpow2.f32 %v1400_v35 }
 0x4d9   :  { %v1664_v36 = vpop.eup %1663 }
 0x4da   :  { %v886_v37 = vadd.f32 1.0, %v1664_v36 }
 0x4dc   :  { %1665 = vrcp.f32 %v886_v37 }
 0x4e6   :  { %v1666_v39 = vpop.eup %1665 }
 0x4e7   :  { %v897_v34 = vmul.f32 %v1666_v39, %v1906_v17  ;;  %v892_v40 = vmul.f32 %v1666_v39, %v1818_v38 }
 0x4e9   :  { %983 = vrot.lane.b32.xlu0 %v897_v34, %s1681_s30  ;;  %1559 = vmatmul.mubr.msk.f32.vlgmr.msra.gmra.mrb[8].mxu1 %vm234_vm3, %v892_v40 }
 0x4ea   :  { %1574 = vmatprep.mubr.msk.f32.mxu1 %vm1677_vm2, %v1678_v22 }
 0x4ed   :  { %899 = vperm.xlu0 %1649, %v1818_v38  }
 0x4f1   :  { %1650 = vset.pattern.permute.xlu0 %v1680_v31 }
 0x4f2   :  { %1208 = vrot.lane.b32.xlu0 %v1392_v41, %s1675_s13 }
 0x55b   :  { %v984_v42 = vpop.permute.xlu0 %983 }
 0x55c   :  { %1570 = vmatmul.mubr.msk.f32.vlgmr.msra.gmra.mrb[12].mxu0 %vm234_vm3, %v984_v42 }
 0x55d   :  { %1584 = vmatprep.mubr.msk.f32.mxu0 %vm1677_vm2, %v1678_v22 }
 0x56c   :  { %v900_v46 = vpop.permute.xlu0 %899 }
 0x56d   :  { %v902_v31 = vmul.f32 %v1834_v43, %v900_v46  ;;  %v877_v43 = vadd.f32 %v1549_v30, %v1796_v24 }
 0x56f   :  { %v1401_v53 = vmul.f32 -1.442695, %v877_v43 }
 0x570   :  { %v1209_v52 = vpop.permute.xlu0 %1208 }
 0x571   :  { %1667 = vpow2.f32 %v1401_v53 }
 0x57b   :  { %v1668_v54 = vpop.eup %1667 }
 0x57c   :  { %v887_v56 = vadd.f32 1.0, %v1668_v54 }
 0x57e   :  { %1669 = vrcp.f32 %v887_v56 }
 0x588   :  { %v1670_v2 = vpop.eup %1669 }
 0x589   :  { %v1357_v4 = vsub.f32 1.0, %v1670_v2  ;;  %v1356_v6 = vmul.f32 %v1670_v2, %v1818_v38  ;;  %v1362_v11 = vmul.f32 %v1670_v2, %v1906_v17 }
 0x5bc   :  { %v972_v44 = vpop.f32.mrb[8].mxu1 }
 0x5bd   :  { %v1560_v45 = vpop.f32.mrb[9].mxu1  ;;  %v976_v51 = vadd.f32 %v972_v44, %v902_v31 }
 0x62f   :  { %v1053_v48 = vpop.f32.mrb[12].mxu0 }
 0x630   :  { %v1057_v49 = vadd.f32 %v1053_v48, %v981_v47  ;;  %v1571_v50 = vpop.f32.mrb[13].mxu0 }
 0x632   :  { %1573 = vmatpush3.msra.mxu1 %v1057_v49  ;;  %1583 = vmatpush3.msra.mxu0 %v1057_v49 }
 0x633   :  { %1575 = vmatmul.mubr.msk.f32.vlgmr.msra.gmra.mrb[10].mxu1 %vm393_vm4, %v1060_v26  ;;  %1577 = vmatprep.subr.mxu1 %v1678_v22 }
 0x634   :  { %1578 = vmatpush3.msra.mxu1 %v976_v51  ;;  %1579 = vmatprep.mubr.msk.f32.mxu1 %vm1677_vm2, %v1678_v22 }
 0x635   :  { %1587 = vmatprep.subr.mxu1 %v1678_v22  ;;  %1585 = vmatmul.mubr.msk.f32.vlgmr.msra.gmra.mrb[14].mxu0 %vm393_vm4, %v1209_v52 }
 0x637   :  { %1580 = vmatmul.mubr.msk.f32.vlgmr.msra.gmra.mrb[12].mxu1 %vm393_vm4, %v1879_v58 }
 0x638   :  { %1588 = vmatpush3.msra.mxu1 %v976_v51  ;;  %1589 = vmatprep.mubr.msk.f32.mxu1 %vm1677_vm2, %v1678_v22 }
 0x63b   :  { %1590 = vmatmul.mubr.msk.f32.vlgmr.msra.gmra.mrb[14].mxu1 %vm393_vm4, %v1392_v41 }
 0x706   :  { %v1129_v55 = vpop.f32.mrb[10].mxu1 }
 0x707   :  { %v1576_v57 = vpop.f32.mrb[11].mxu1 }
 0x708   :  { %v1278_v59 = vpop.f32.mrb[14].mxu0 }
 0x709   :  { %v1586_v60 = vpop.f32.mrb[15].mxu0 }
 0x70a   :  { %v1201_v61 = vpop.f32.mrb[12].mxu1 }
 0x70b   :  { %v1202_v62 = vadd.f32 %v1201_v61, %v1129_v55  ;;  %v1581_v58 = vpop.f32.mrb[13].mxu1 }
 0x70d   :  { %v1205_v63 = vadd.f32 %v1888_v3, %v1202_v62 }
 0x70e   :  { %v1350_v0 = vpop.f32.mrb[14].mxu1 }
 0x70f   :  { %1671 = vtanh.f32 %v1205_v63  ;;  %v1351_v22 = vadd.f32 %v1350_v0, %v1278_v59  ;;  %v1591_v1 = vpop.f32.mrb[15].mxu1 }
 0x711   :  { %v1354_v24 = vadd.f32 %v1888_v3, %v1351_v22 }
 0x713   :  { %1673 = vtanh.f32 %v1354_v24 }
 0x719   :  { %v1672_v5 = vpop.eup %1671 }
 0x71a   :  { %v1358_v7 = vmul.f32 %v1672_v5, %v1357_v4 }
 0x71c   :  { %v1359_v8 = vadd.f32 %v1358_v7, %v1356_v6 }
 0x71d   :  { %v1674_v9 = vpop.eup %1673 }
 0x71e   :  { %1364 = vrot.lane.b32.xlu0 %v1674_v9, %s1682_s4  ;;  %1408 = vst.msk [vmem:[%s1961_s5 + $0x8] sm:$0xff] %vm234_vm3, %v1359_v8 }
 0x790   :  { %v1365_v10 = vpop.permute.xlu0 %1364 }
 0x791   :  { %v1367_v3 = vmul.f32 %v1365_v10, %v1357_v4 }
 0x793   :  { %v1368_v13 = vadd.f32 %v1367_v3, %v1362_v11 }
 0x795   :  { %1409 = vst.msk [vmem:[%s1961_s5 + $0x8] sm:$0xff] %vm705_vm5, %v1368_v13 }

</bundles_post_ra>
